<compile_context>
chip_gen: v5e
topology: v5e:2x2
jax: 0.10.0
libtpu: 0.0.40
codegen_flags: <defaults>
</compile_context>

<pallas_src>
import math
from functools import partial

import jax
import jax.numpy as jnp
from jax.experimental import pallas as pl
from jax.experimental.pallas import tpu as pltpu


def _pos_enc_dropout_kernel(seed_ref, x_ref, pe_ref, o_ref, *, p, training):
    # seed_ref: (1,) int32 in SMEM (scalar prefetch)
    # x_ref / pe_ref / o_ref: (TS, B*D) VMEM tiles
    y = x_ref[...] + pe_ref[...]

    if training and p > 0.0:
        ts, w = x_ref.shape
        # Global element index of every entry in this tile (unique across the grid,
        # so every tile gets an independent slice of the random stream).
        row = jax.lax.broadcasted_iota(jnp.int32, (ts, w), 0)
        col = jax.lax.broadcasted_iota(jnp.int32, (ts, w), 1)
        base_row = pl.program_id(0) * ts
        idx = (row + base_row) * jnp.int32(w) + col

        # Stateless 32-bit integer mix (degski-style xorshift-multiply), seed folded in.
        z = idx ^ (seed_ref[0] * jnp.int32(0x27D4EB2F))
        z = (z ^ (z >> 16)) * jnp.int32(0x45D9F3B)
        z = (z ^ (z >> 16)) * jnp.int32(0x45D9F3B)
        z = z ^ (z >> 16)

        # Integer threshold compare on 24 uniform bits: keep with prob (1 - p).
        bits24 = z & jnp.int32(0x00FFFFFF)
        thr = jnp.int32(int(round(p * float(1 << 24))))
        keep = bits24 >= thr

        scale = jnp.float32(1.0 / (1.0 - p))
        y = jnp.where(keep, y * scale, jnp.float32(0.0))

    o_ref[...] = y.astype(o_ref.dtype)


def make_pe_buffer(d_model: int, max_len: int = 5000) -> jnp.ndarray:
    """Deterministic sinusoidal table, identical to the PyTorch __init__."""
    position = jnp.arange(0, max_len, dtype=jnp.float32)[:, None]           # (L, 1)
    div_term = jnp.exp(
        jnp.arange(0, d_model, 2, dtype=jnp.float32) * -(math.log(10000.0) / d_model)
    )                                                                        # (D/2,)
    pe = jnp.zeros((max_len, 1, d_model), dtype=jnp.float32)
    pe = pe.at[:, 0, 0::2].set(jnp.sin(position * div_term))
    pe = pe.at[:, 0, 1::2].set(jnp.cos(position * div_term))
    return pe


def _choose_tile_rows(s: int, row_bytes: int, target_bytes: int = 2 * 1024 * 1024) -> int:
    """Rows per tile: ~2 MiB per array tile (fits v7x 64 MiB VMEM comfortably with
    double-buffered x/pe/out), rounded to a sublane multiple of 8."""
    rows = max(1, target_bytes // max(1, row_bytes))
    if rows >= s:
        return s                       # single full block (always legal)
    rows = max(8, (rows // 8) * 8)     # keep second-to-last block dim 8-aligned
    return min(rows, s)


def positional_encoding_forward(x, pe, seed, *, p: float = 0.1, training: bool = True):
    """x: (S, B, D); pe: (max_len, 1, D); seed: python int (runtime scalar)."""
    S, B, D = x.shape
    W = B * D

    # Lane-dense layout: collapse batch into the lane axis, pre-tile pe over batch.
    # Flattened column index is b*D + d, so repeating the D-row B times matches the
    # batch broadcast of the original (S, B, D) add.
    x2 = x.reshape(S, W)
    pe2 = jnp.tile(pe[:S, 0, :], (1, B))                      # (S, B*D)

    seed_arr = jnp.array([seed], dtype=jnp.int32)

    ts = _choose_tile_rows(S, W * x.dtype.itemsize)
    grid = (pl.cdiv(S, ts),)

    kernel = partial(_pos_enc_dropout_kernel, p=float(p), training=bool(training))

    y2 = pl.pallas_call(
        kernel,
        out_shape=jax.ShapeDtypeStruct((S, W), x.dtype),
        grid_spec=pltpu.PrefetchScalarGridSpec(
            num_scalar_prefetch=1,                            # seed -> SMEM
            grid=grid,
            in_specs=[
                pl.BlockSpec((ts, W), lambda i, seed: (i, 0)),   # x tile
                pl.BlockSpec((ts, W), lambda i, seed: (i, 0)),   # pe tile
            ],
            out_specs=pl.BlockSpec((ts, W), lambda i, seed: (i, 0)),
        ),
        compiler_params=pltpu.CompilerParams(
            dimension_semantics=("parallel",),                # shard S-tiles over v7x's 2 TCs
            vmem_limit_bytes=32 * 1024 * 1024,                # safe on v5e/v6e/v7x
        ),
    )(seed_arr, x2, pe2)

    return y2.reshape(S, B, D)


if __name__ == "__main__":
    # Small shapes consistent with the module: seq=8, batch=2, d_model=32.
    S, B, D = 8, 2, 32
    MAX_LEN = 64  # only the first S rows are ever read; keep the table small

    key = jax.random.PRNGKey(0)
    x = jax.random.normal(key, (S, B, D), dtype=jnp.float32)
    pe = make_pe_buffer(D, MAX_LEN)

    # Eval mode (dropout = identity): exact check against pure-JAX reference.
    y_eval = positional_encoding_forward(x, pe, seed=0, p=0.1, training=False)
    y_ref = x + pe[:S]
    assert jnp.allclose(jax.block_until_ready(y_eval), y_ref, atol=1e-6), "eval-mode mismatch"

    # Training mode: in-kernel dropout.  Kept elements must equal (x+pe)/(1-p),
    # dropped elements must be exactly zero.
    p = 0.1
    y_train = positional_encoding_forward(x, pe, seed=1234, p=p, training=True)
    y_train = jax.block_until_ready(y_train)
    scaled = (x + pe[:S]) / (1.0 - p)
    recon = jnp.where(y_train != 0, y_train, scaled)
    assert jnp.allclose(recon, scaled, atol=1e-6), "training-mode kept-value mismatch"

    print("KERNEL_OK")
</pallas_src>

<mosaic_0001>
module attributes {stable_mosaic.version = 11 : i64} {
  func.func @_pos_enc_dropout_kernel(%arg0: i32, %arg1: memref<1xi32, #tpu.memory_space<smem>>, %arg2: memref<8x64xf32, #tpu.memory_space<vmem>>, %arg3: memref<8x64xf32, #tpu.memory_space<vmem>>, %arg4: memref<8x64xf32, #tpu.memory_space<vmem>>) attributes {dimension_semantics = [#tpu.dimension_semantics<parallel>], iteration_bounds = array<i64: 1>, scalar_prefetch = 1 : i64, scratch_operands = 0 : i64, tpu.core_type = #tpu.core_type<tc>, window_params = [{transform_indices = @transform_0, window_bounds = array<i64: 8, 64>}, {transform_indices = @transform_1, window_bounds = array<i64: 8, 64>}, {transform_indices = @transform_2, window_bounds = array<i64: 8, 64>}]} {
    %c0 = arith.constant 0 : index
    %c0_0 = arith.constant 0 : index
    %0 = vector.load %arg2[%c0, %c0_0] : memref<8x64xf32, #tpu.memory_space<vmem>>, vector<8x64xf32>
    %c0_1 = arith.constant 0 : index
    %c0_2 = arith.constant 0 : index
    %1 = vector.load %arg3[%c0_1, %c0_2] : memref<8x64xf32, #tpu.memory_space<vmem>>, vector<8x64xf32>
    %2 = arith.addf %0, %1 : vector<8x64xf32>
    %c0_3 = arith.constant 0 : index
    %c0_4 = arith.constant 0 : index
    %3 = vector.load %arg4[%c0_3, %c0_4] : memref<8x64xf32, #tpu.memory_space<vmem>>, vector<8x64xf32>
    tpu.vector_store %arg4[%c0_3, %c0_4], %2 {strides = array<i32>} : memref<8x64xf32, #tpu.memory_space<vmem>>, vector<8x64xf32>,
    return
  }
  func.func @transform_0(%arg0: i32, %arg1: memref<1xi32, #tpu.memory_space<smem>>) -> (i32, i32) {
    %c0_i32 = arith.constant 0 : i32
    %c0_i32_0 = arith.constant 0 : i32
    return %arg0, %c0_i32 : i32, i32
  }
  func.func @transform_1(%arg0: i32, %arg1: memref<1xi32, #tpu.memory_space<smem>>) -> (i32, i32) {
    %c0_i32 = arith.constant 0 : i32
    %c0_i32_0 = arith.constant 0 : i32
    return %arg0, %c0_i32 : i32, i32
  }
  func.func @transform_2(%arg0: i32, %arg1: memref<1xi32, #tpu.memory_space<smem>>) -> (i32, i32) {
    %c0_i32 = arith.constant 0 : i32
    %c0_i32_0 = arith.constant 0 : i32
    return %arg0, %c0_i32 : i32, i32
  }
}

</mosaic_0001>

<bundles_post_ra>
// kernel: tpu_custom_call.1
= control target key start
LH: loop header
LB: loop body
LE: loop exit
PB: predicated region body
PF: predicated region fallthrough
CT: control target
= control target key end

     0   :  { %9 = vsyncpa [#allocation5], 0  ;;  %s178_s0 = inlined_call_operand.<no memory space> [shape: s32[1], index: 0, kind: input, shape index: {}]   ;;  %s179_s1 = inlined_call_operand.hbm [shape: f32[8,64], index: 1, kind: input, shape index: {}]   ;;  %s180_s2 = inlined_call_operand.hbm [shape: f32[8,64], index: 2, kind: input, shape index: {}]   ;;  %s181_s3 = inlined_call_operand.hbm [shape: f32[8,64], index: 3, kind: output, shape index: {}]  }
   0x1   :  { %10 = vsyncpa [#allocation8], 0 }
   0x2   :  { %11 = vsyncpa [#allocation6], 0  ;;  %s17_s14 = sshll.u32 %s179_s1, 4  ;;  %s146_s15 = smov [#allocation4]   ;;  %s18_s14 = int_to_ptr.hbm [resolvable:$true] %s17_s14 }
   0x3   :  { %s19_s16 = sshll.u32 %s146_s15, 4  ;;  %s28_s18 = sshll.u32 %s180_s2, 4  ;;  %s20_s16 = int_to_ptr.vmem [resolvable:$true] %s19_s16  ;;  %s29_s18 = int_to_ptr.hbm [resolvable:$true] %s28_s18 }
   0x4   :  { %22 = dma.hbm_to_vmem [thread:$0]  %s18_s14, 128, %s20_s16, [#allocation5]  }
   0x5   :  { %s147_s19 = smov [#allocation7]  }
   0x6   :  { %s30_s20 = sshll.u32 %s147_s19, 4  ;;  %s31_s20 = int_to_ptr.vmem [resolvable:$true] %s30_s20 }
   0x7   :  { %33 = dma.hbm_to_vmem [thread:$0]  %s29_s18, 128, %s31_s20, [#allocation8]  }
   0x8   :  { %140 = dma.done.wait [#allocation5], 128  }
   0x9   :  { %141 = vsyncadd [#allocation5], 4294967168 }
   0xa   :  { %142 = dma.done.wait [#allocation8], 128  }
   0xb   :  { %143 = vsyncadd [#allocation8], 4294967168  ;;  %s148_s21 = smov [#allocation9]   ;;  %s54_s24 = sshll.u32 %s181_s3, 4  ;;  %v42_v0 = vld [vmem:[#allocation4] sm:$0xff]  ;;  %v43_v1 = vld [vmem:[#allocation7] sm:$0xff]  ;;  %s55_s24 = int_to_ptr.hbm [resolvable:$true] %s54_s24 }
   0xc   :  { %s52_s1 = sshll.u32 %s148_s21, 4  ;;  %vm45_vm0 = vcmask 523264   ;;  %v44_v2 = vadd.f32 %v43_v1, %v42_v0  ;;  %s53_s1 = int_to_ptr.vmem [resolvable:$true] %s52_s1 }
   0xe   :  { %46 = vst.msk [vmem:[#allocation9] sm:$0xff] %vm45_vm0, %v44_v2 }
   0xf   :  { %57 = dma.vmem_to_hbm [thread:$0]  %s53_s1, 128, %s55_s24, [#allocation6]  }
  0x10   :  { %144 = dma.done.wait [#allocation6], 128  }
  0x11   :  { %145 = vsyncadd [#allocation6], 4294967168 }
  0x12   :  { %62 = vsyncpa [#allocation5], 1 }
  0x13   :  { %63 = vsyncpa [#allocation8], 1 }
  0x14   :  { %64 = vsyncpa [#allocation6], 1 }

</bundles_post_ra>
